<compile_context>
chip_gen: v5e
topology: v5e:2x2
jax: 0.10.0
libtpu: 0.0.40
codegen_flags: <defaults>
</compile_context>

<pallas_src>
import jax
import jax.numpy as jnp
from jax.experimental import pallas as pl
from jax.experimental.pallas import tpu as pltpu


def _round_up(x, m):
    return ((x + m - 1) // m) * m


def metric_target_loss(embedding1, embedding2, metric_score,
                       output1, target1, output2, target2, alpha=0.5):
    B, D = embedding1.shape
    _, C = output1.shape

    lane_pad = lambda n: _round_up(n, 128)
    e_bytes = jnp.dtype(embedding1.dtype).itemsize
    o_bytes = jnp.dtype(output1.dtype).itemsize

    # Honest per-row resident VMEM cost INCLUDING the x2 double-buffer factor:
    # two embedding tiles + two log-prob tiles + lane-padded (.,3) side slab.
    per_row_db = 2 * (2 * lane_pad(D) * e_bytes
                      + 2 * lane_pad(C) * o_bytes
                      + 128 * 4)
    budget = 20 * 1024 * 1024                       # double-buffered input budget
    tile_b = max(8, min(4096, (budget // per_row_db) // 8 * 8))
    tile_b = min(tile_b, _round_up(B, 8))
    n_inner = -(-B // tile_b)                       # last tile may overrun; masked

    # Pack side inputs into one slab -> one side DMA per tile.
    side = jnp.stack([metric_score.astype(jnp.float32),
                      target1.astype(jnp.float32),
                      target2.astype(jnp.float32)], axis=1)          # (B, 3)

    def kernel(e1_ref, e2_ref, side_ref, o1_ref, o2_ref, out_ref):
        i = pl.program_id(0)

        @pl.when(i == 0)
        def _init():
            out_ref[...] = jnp.zeros_like(out_ref)

        # Validity of rows past the true batch size (grid overrun on last tile).
        row0 = i * tile_b
        rows = jax.lax.broadcasted_iota(jnp.int32, (tile_b, 1), 0) + row0
        row_valid = rows < B                                         # (tile_b, 1)

        side_tile = side_ref[...]                                    # (tile_b, 3)
        score = side_tile[:, 0:1]
        tgt1 = side_tile[:, 1:2].astype(jnp.int32)
        tgt2 = side_tile[:, 2:3].astype(jnp.int32)

        # Squared error of the row-wise L2 distance vs metric_score.
        e1 = e1_ref[...].astype(jnp.float32)
        e2 = e2_ref[...].astype(jnp.float32)
        d = e1 - e2
        norm = jnp.sqrt(jnp.sum(d * d, axis=1, keepdims=True))       # (tile_b, 1)
        se = jnp.where(row_valid, (norm - score) * (norm - score), 0.0)

        # NLL contribution: -logprob[row, target[row]] via one-hot lane mask.
        def neg_picked(o_ref, tgt):
            o = o_ref[...].astype(jnp.float32)                       # (tile_b, C)
            cls = jax.lax.broadcasted_iota(jnp.int32, o.shape, 1)
            picked = jnp.sum(jnp.where(cls == tgt, o, 0.0),
                             axis=1, keepdims=True)                  # (tile_b, 1)
            return jnp.where(row_valid, -picked, 0.0)

        n1 = neg_picked(o1_ref, tgt1)
        n2 = neg_picked(o2_ref, tgt2)

        # Per-step sublane partial reduce (XLU), accumulate into a single
        # lane-dense (1, 128) resident output block: lanes 0/1/2 carry the sums.
        se_s = jnp.sum(se, axis=0, keepdims=True)                    # (1, 1)
        n1_s = jnp.sum(n1, axis=0, keepdims=True)
        n2_s = jnp.sum(n2, axis=0, keepdims=True)

        lane = jax.lax.broadcasted_iota(jnp.int32, out_ref.shape, 1)
        out_ref[...] += (jnp.where(lane == 0, se_s, 0.0)
                         + jnp.where(lane == 1, n1_s, 0.0)
                         + jnp.where(lane == 2, n2_s, 0.0))

    grid_spec = pltpu.PrefetchScalarGridSpec(
        num_scalar_prefetch=0,
        grid=(n_inner,),
        in_specs=[
            pl.BlockSpec((tile_b, D), lambda i: (i, 0)),
            pl.BlockSpec((tile_b, D), lambda i: (i, 0)),
            pl.BlockSpec((tile_b, 3), lambda i: (i, 0)),
            pl.BlockSpec((tile_b, C), lambda i: (i, 0)),
            pl.BlockSpec((tile_b, C), lambda i: (i, 0)),
        ],
        out_specs=pl.BlockSpec((1, 128), lambda i: (0, 0)),
    )

    bytes_accessed = (embedding1.size * e_bytes + embedding2.size * e_bytes
                      + side.size * 4
                      + output1.size * o_bytes + output2.size * o_bytes
                      + 128 * 4)
    cost = pl.CostEstimate(flops=int(B * (4 * D + 6 * C + 12)),
                           transcendentals=int(B),
                           bytes_accessed=int(bytes_accessed))

    # 32 MiB limit is <= the scoped default on v6e/v7x and well under physical
    # VMEM on v5e/v6e/v7x; the budget above keeps the real footprint below it.
    partials = pl.pallas_call(
        kernel,
        out_shape=jax.ShapeDtypeStruct((1, 128), jnp.float32),
        grid_spec=grid_spec,
        compiler_params=pltpu.CompilerParams(
            dimension_semantics=("arbitrary",),
            vmem_limit_bytes=32 * 1024 * 1024),
        cost_estimate=cost,
    )(embedding1, embedding2, side, output1, output2)

    loss0 = partials[0, 0] / B
    loss1 = partials[0, 1] / B
    loss2 = partials[0, 2] / B
    # alpha blend outside the kernel (differentiable w.r.t. alpha, matching the
    # nn.Parameter semantics).
    alpha = jnp.asarray(alpha, jnp.float32)
    loss = alpha * loss0 + (1.0 - alpha) * (loss1 + loss2)
    return loss, loss0, loss1, loss2


def _reference(embedding1, embedding2, metric_score,
               output1, target1, output2, target2, alpha=0.5):
    diff_m = jnp.linalg.norm(embedding1 - embedding2, axis=1)
    loss0 = jnp.mean((diff_m - metric_score) ** 2)
    loss1 = -jnp.mean(jnp.take_along_axis(output1, target1[:, None], axis=1))
    loss2 = -jnp.mean(jnp.take_along_axis(output2, target2[:, None], axis=1))
    loss = alpha * loss0 + (1.0 - alpha) * (loss1 + loss2)
    return loss, loss0, loss1, loss2


if __name__ == "__main__":
    key = jax.random.PRNGKey(0)
    B, D, C = 8, 32, 4
    k1, k2, k3, k4, k5, k6, k7 = jax.random.split(key, 7)

    embedding1 = jax.random.normal(k1, (B, D), dtype=jnp.float32)
    embedding2 = jax.random.normal(k2, (B, D), dtype=jnp.float32)
    metric_score = jax.random.uniform(k3, (B,), dtype=jnp.float32) * 5.0
    output1 = jax.nn.log_softmax(jax.random.normal(k4, (B, C), dtype=jnp.float32), axis=-1)
    target1 = jax.random.randint(k5, (B,), 0, C, dtype=jnp.int32)
    output2 = jax.nn.log_softmax(jax.random.normal(k6, (B, C), dtype=jnp.float32), axis=-1)
    target2 = jax.random.randint(k7, (B,), 0, C, dtype=jnp.int32)

    alpha = 0.5  # deterministic init of the nn.Parameter

    out = metric_target_loss(embedding1, embedding2, metric_score,
                             output1, target1, output2, target2, alpha=alpha)
    out = jax.block_until_ready(out)

    ref = _reference(embedding1, embedding2, metric_score,
                     output1, target1, output2, target2, alpha=alpha)
    for a, b in zip(out, ref):
        assert jnp.allclose(a, b, rtol=1e-5, atol=1e-5), (a, b)

    print("KERNEL_OK")
</pallas_src>

<mosaic_0001>
module attributes {stable_mosaic.version = 11 : i64} {
  func.func @kernel(%arg0: i32, %arg1: memref<8x32xf32, #tpu.memory_space<vmem>>, %arg2: memref<8x32xf32, #tpu.memory_space<vmem>>, %arg3: memref<8x3xf32, #tpu.memory_space<vmem>>, %arg4: memref<8x4xf32, #tpu.memory_space<vmem>>, %arg5: memref<8x4xf32, #tpu.memory_space<vmem>>, %arg6: memref<1x128xf32, #tpu.memory_space<vmem>>) attributes {dimension_semantics = [#tpu.dimension_semantics<arbitrary>], iteration_bounds = array<i64: 1>, scalar_prefetch = 0 : i64, scratch_operands = 0 : i64, tpu.core_type = #tpu.core_type<tc>, window_params = [{transform_indices = @transform_0, window_bounds = array<i64: 8, 32>}, {transform_indices = @transform_1, window_bounds = array<i64: 8, 32>}, {transform_indices = @transform_2, window_bounds = array<i64: 8, 3>}, {transform_indices = @transform_3, window_bounds = array<i64: 8, 4>}, {transform_indices = @transform_4, window_bounds = array<i64: 8, 4>}, {pipeline_mode = #tpu.pipeline_mode<synchronous>, transform_indices = @transform_5, window_bounds = array<i64: 1, 128>}]} {
    %c0_i32 = arith.constant 0 : i32
    %0 = arith.cmpi eq, %arg0, %c0_i32 : i32
    %1 = arith.extui %0 : i1 to i32
    %c0_i32_0 = arith.constant 0 : i32
    %2 = arith.cmpi ne, %1, %c0_i32_0 : i32
    scf.if %2 {
      %cst_31 = arith.constant 0.000000e+00 : f32
      %81 = vector.broadcast %cst_31 : f32 to vector<1x128xf32>
      %c0_32 = arith.constant 0 : index
      %c0_33 = arith.constant 0 : index
      %82 = vector.load %arg6[%c0_32, %c0_33] : memref<1x128xf32, #tpu.memory_space<vmem>>, vector<1x128xf32>
      tpu.vector_store %arg6[%c0_32, %c0_33], %81 {strides = array<i32>} : memref<1x128xf32, #tpu.memory_space<vmem>>, vector<1x128xf32>,
    } else {
    }
    %c8_i32 = arith.constant 8 : i32
    %3 = arith.muli %arg0, %c8_i32 : i32
    %4 = tpu.iota {dimensions = array<i32: 0>} : vector<8x1xi32>
    %5 = vector.broadcast %3 : i32 to vector<8x1xi32>
    %6 = arith.addi %4, %5 : vector<8x1xi32>
    %c8_i32_1 = arith.constant 8 : i32
    %7 = vector.broadcast %c8_i32_1 : i32 to vector<8x1xi32>
    %8 = arith.cmpi slt, %6, %7 : vector<8x1xi32>
    %c0 = arith.constant 0 : index
    %c0_2 = arith.constant 0 : index
    %9 = vector.load %arg3[%c0, %c0_2] : memref<8x3xf32, #tpu.memory_space<vmem>>, vector<8x3xf32>
    %10 = vector.extract_strided_slice %9 {offsets = [0, 0], sizes = [8, 1], strides = [1, 1]} : vector<8x3xf32> to vector<8x1xf32>
    %11 = vector.extract_strided_slice %9 {offsets = [0, 1], sizes = [8, 1], strides = [1, 1]} : vector<8x3xf32> to vector<8x1xf32>
    %12 = arith.fptosi %11 : vector<8x1xf32> to vector<8x1xi32>
    %13 = vector.extract_strided_slice %9 {offsets = [0, 2], sizes = [8, 1], strides = [1, 1]} : vector<8x3xf32> to vector<8x1xf32>
    %14 = arith.fptosi %13 : vector<8x1xf32> to vector<8x1xi32>
    %c0_3 = arith.constant 0 : index
    %c0_4 = arith.constant 0 : index
    %15 = vector.load %arg1[%c0_3, %c0_4] : memref<8x32xf32, #tpu.memory_space<vmem>>, vector<8x32xf32>
    %c0_5 = arith.constant 0 : index
    %c0_6 = arith.constant 0 : index
    %16 = vector.load %arg2[%c0_5, %c0_6] : memref<8x32xf32, #tpu.memory_space<vmem>>, vector<8x32xf32>
    %17 = arith.subf %15, %16 : vector<8x32xf32>
    %18 = arith.mulf %17, %17 : vector<8x32xf32>
    %cst = arith.constant dense<0.000000e+00> : vector<8xf32>
    %19 = vector.multi_reduction <add>, %18, %cst [1] : vector<8x32xf32> to vector<8xf32>
    %20 = vector.shape_cast %19 : vector<8xf32> to vector<8x1xf32>
    %21 = math.sqrt %20 : vector<8x1xf32>
    %22 = arith.subf %21, %10 : vector<8x1xf32>
    %23 = arith.subf %21, %10 : vector<8x1xf32>
    %24 = arith.mulf %22, %23 : vector<8x1xf32>
    %cst_7 = arith.constant 0.000000e+00 : f32
    %25 = vector.broadcast %cst_7 : f32 to vector<8x1xf32>
    %26 = arith.select %8, %24, %25 : vector<8x1xi1>, vector<8x1xf32>
    %c0_8 = arith.constant 0 : index
    %c0_9 = arith.constant 0 : index
    %27 = vector.load %arg4[%c0_8, %c0_9] : memref<8x4xf32, #tpu.memory_space<vmem>>, vector<8x4xf32>
    %28 = tpu.iota {dimensions = array<i32: 1>} : vector<8x4xi32>
    %29 = vector.broadcast %12 : vector<8x1xi32> to vector<8x4xi32>
    %30 = arith.cmpi eq, %28, %29 : vector<8x4xi32>
    %cst_10 = arith.constant 0.000000e+00 : f32
    %31 = vector.broadcast %cst_10 : f32 to vector<8x4xf32>
    %32 = arith.select %30, %27, %31 : vector<8x4xi1>, vector<8x4xf32>
    %cst_11 = arith.constant dense<0.000000e+00> : vector<8xf32>
    %33 = vector.multi_reduction <add>, %32, %cst_11 [1] : vector<8x4xf32> to vector<8xf32>
    %34 = vector.shape_cast %33 : vector<8xf32> to vector<8x1xf32>
    %cst_12 = arith.constant 0.000000e+00 : f32
    %35 = vector.broadcast %cst_12 : f32 to vector<8x1xf32>
    %36 = arith.subf %35, %34 : vector<8x1xf32>
    %cst_13 = arith.constant 0.000000e+00 : f32
    %37 = vector.broadcast %cst_13 : f32 to vector<8x1xf32>
    %38 = arith.select %8, %36, %37 : vector<8x1xi1>, vector<8x1xf32>
    %c0_14 = arith.constant 0 : index
    %c0_15 = arith.constant 0 : index
    %39 = vector.load %arg5[%c0_14, %c0_15] : memref<8x4xf32, #tpu.memory_space<vmem>>, vector<8x4xf32>
    %40 = tpu.iota {dimensions = array<i32: 1>} : vector<8x4xi32>
    %41 = vector.broadcast %14 : vector<8x1xi32> to vector<8x4xi32>
    %42 = arith.cmpi eq, %40, %41 : vector<8x4xi32>
    %cst_16 = arith.constant 0.000000e+00 : f32
    %43 = vector.broadcast %cst_16 : f32 to vector<8x4xf32>
    %44 = arith.select %42, %39, %43 : vector<8x4xi1>, vector<8x4xf32>
    %cst_17 = arith.constant dense<0.000000e+00> : vector<8xf32>
    %45 = vector.multi_reduction <add>, %44, %cst_17 [1] : vector<8x4xf32> to vector<8xf32>
    %46 = vector.shape_cast %45 : vector<8xf32> to vector<8x1xf32>
    %cst_18 = arith.constant 0.000000e+00 : f32
    %47 = vector.broadcast %cst_18 : f32 to vector<8x1xf32>
    %48 = arith.subf %47, %46 : vector<8x1xf32>
    %cst_19 = arith.constant 0.000000e+00 : f32
    %49 = vector.broadcast %cst_19 : f32 to vector<8x1xf32>
    %50 = arith.select %8, %48, %49 : vector<8x1xi1>, vector<8x1xf32>
    %cst_20 = arith.constant dense<0.000000e+00> : vector<1xf32>
    %51 = vector.multi_reduction <add>, %26, %cst_20 [0] : vector<8x1xf32> to vector<1xf32>
    %52 = vector.shape_cast %51 : vector<1xf32> to vector<1x1xf32>
    %cst_21 = arith.constant dense<0.000000e+00> : vector<1xf32>
    %53 = vector.multi_reduction <add>, %38, %cst_21 [0] : vector<8x1xf32> to vector<1xf32>
    %54 = vector.shape_cast %53 : vector<1xf32> to vector<1x1xf32>
    %cst_22 = arith.constant dense<0.000000e+00> : vector<1xf32>
    %55 = vector.multi_reduction <add>, %50, %cst_22 [0] : vector<8x1xf32> to vector<1xf32>
    %56 = vector.shape_cast %55 : vector<1xf32> to vector<1x1xf32>
    %57 = tpu.iota {dimensions = array<i32: 1>} : vector<1x128xi32>
    %c0_23 = arith.constant 0 : index
    %c0_24 = arith.constant 0 : index
    %58 = vector.load %arg6[%c0_23, %c0_24] : memref<1x128xf32, #tpu.memory_space<vmem>>, vector<1x128xf32>
    %c0_i32_25 = arith.constant 0 : i32
    %59 = vector.broadcast %c0_i32_25 : i32 to vector<1x128xi32>
    %60 = arith.cmpi eq, %57, %59 : vector<1x128xi32>
    %cst_26 = arith.constant 0.000000e+00 : f32
    %61 = vector.shape_cast %52 : vector<1x1xf32> to vector<1x1xf32>
    %62 = vector.broadcast %61 : vector<1x1xf32> to vector<1x128xf32>
    %63 = vector.broadcast %cst_26 : f32 to vector<1x128xf32>
    %64 = arith.select %60, %62, %63 : vector<1x128xi1>, vector<1x128xf32>
    %c1_i32 = arith.constant 1 : i32
    %65 = vector.broadcast %c1_i32 : i32 to vector<1x128xi32>
    %66 = arith.cmpi eq, %57, %65 : vector<1x128xi32>
    %cst_27 = arith.constant 0.000000e+00 : f32
    %67 = vector.shape_cast %54 : vector<1x1xf32> to vector<1x1xf32>
    %68 = vector.broadcast %67 : vector<1x1xf32> to vector<1x128xf32>
    %69 = vector.broadcast %cst_27 : f32 to vector<1x128xf32>
    %70 = arith.select %66, %68, %69 : vector<1x128xi1>, vector<1x128xf32>
    %71 = arith.addf %64, %70 : vector<1x128xf32>
    %c2_i32 = arith.constant 2 : i32
    %72 = vector.broadcast %c2_i32 : i32 to vector<1x128xi32>
    %73 = arith.cmpi eq, %57, %72 : vector<1x128xi32>
    %cst_28 = arith.constant 0.000000e+00 : f32
    %74 = vector.shape_cast %56 : vector<1x1xf32> to vector<1x1xf32>
    %75 = vector.broadcast %74 : vector<1x1xf32> to vector<1x128xf32>
    %76 = vector.broadcast %cst_28 : f32 to vector<1x128xf32>
    %77 = arith.select %73, %75, %76 : vector<1x128xi1>, vector<1x128xf32>
    %78 = arith.addf %71, %77 : vector<1x128xf32>
    %79 = arith.addf %58, %78 : vector<1x128xf32>
    %c0_29 = arith.constant 0 : index
    %c0_30 = arith.constant 0 : index
    %80 = vector.load %arg6[%c0_29, %c0_30] : memref<1x128xf32, #tpu.memory_space<vmem>>, vector<1x128xf32>
    tpu.vector_store %arg6[%c0_29, %c0_30], %79 {strides = array<i32>} : memref<1x128xf32, #tpu.memory_space<vmem>>, vector<1x128xf32>,
    return
  }
  func.func @transform_0(%arg0: i32) -> (i32, i32) {
    %c0_i32 = arith.constant 0 : i32
    %c0_i32_0 = arith.constant 0 : i32
    return %arg0, %c0_i32 : i32, i32
  }
  func.func @transform_1(%arg0: i32) -> (i32, i32) {
    %c0_i32 = arith.constant 0 : i32
    %c0_i32_0 = arith.constant 0 : i32
    return %arg0, %c0_i32 : i32, i32
  }
  func.func @transform_2(%arg0: i32) -> (i32, i32) {
    %c0_i32 = arith.constant 0 : i32
    %c0_i32_0 = arith.constant 0 : i32
    return %arg0, %c0_i32 : i32, i32
  }
  func.func @transform_3(%arg0: i32) -> (i32, i32) {
    %c0_i32 = arith.constant 0 : i32
    %c0_i32_0 = arith.constant 0 : i32
    return %arg0, %c0_i32 : i32, i32
  }
  func.func @transform_4(%arg0: i32) -> (i32, i32) {
    %c0_i32 = arith.constant 0 : i32
    %c0_i32_0 = arith.constant 0 : i32
    return %arg0, %c0_i32 : i32, i32
  }
  func.func @transform_5(%arg0: i32) -> (i32, i32) {
    %c0_i32 = arith.constant 0 : i32
    %c0_i32_0 = arith.constant 0 : i32
    %c0_i32_1 = arith.constant 0 : i32
    return %c0_i32, %c0_i32_0 : i32, i32
  }
}

</mosaic_0001>

<bundles_post_ra>
// kernel: tpu_custom_call.1
= control target key start
LH: loop header
LB: loop body
LE: loop exit
PB: predicated region body
PF: predicated region fallthrough
CT: control target
= control target key end

     0   :  { %v176_v4 = vmov 2   ;;  %v177_v7 = vmov 1   ;;  %s238_s0 = inlined_call_operand.vmem [shape: f32[8,32], index: 0, kind: input, shape index: {}]   ;;  %s239_s1 = inlined_call_operand.vmem [shape: f32[8,32], index: 1, kind: input, shape index: {}]   ;;  %s240_s2 = inlined_call_operand.vmem [shape: f32[8,3], index: 2, kind: input, shape index: {}]   ;;  %s241_s3 = inlined_call_operand.vmem [shape: f32[8,4], index: 3, kind: input, shape index: {}]   ;;  %s242_s4 = inlined_call_operand.vmem [shape: f32[8,4], index: 4, kind: input, shape index: {}]   ;;  %s243_s5 = inlined_call_operand.hbm [shape: f32[1,128], index: 5, kind: output, shape index: {}]  }
   0x1   :  { %v34_v0 = vld [vmem:[%s238_s0] sm:$0xff]  ;;  %145 = vset.pattern.permute.xlu1 %v176_v4  ;;  %144 = vset.pattern.permute.xlu0 %v177_v7 }
   0x2   :  { %v35_v1 = vld [vmem:[%s239_s1] sm:$0xff] }
   0x3   :  { %v32_v2 = vld [vmem:[%s240_s2] sm:$0xff]  ;;  %v36_v3 = vsub.f32 %v34_v0, %v35_v1 }
   0x4   :  { %vm134_vm0 = vcmp.lt.s32.totalorder %v32_v2, 0  ;;  %v135_v5 = vceil.f32 %v32_v2  ;;  %v136_v6 = vfloor.f32 %v32_v2 }
   0x5   :  { %10 = vsyncpa [#allocation3], 0  ;;  %vm38_vm1 = vcmask 261120   ;;  %v37_v8 = vmul.f32 %v36_v3, %v36_v3  ;;  %v58_v12 = vlaneseq  ;;  %v178_v13 = vmov 0   ;;  %v71_v15 = vld [vmem:[%s242_s4] sm:$0xff]  ;;  %s125_s27 = sshll.u32 %s243_s5, 4  ;;  %s126_s27 = int_to_ptr.hbm [resolvable:$true] %s125_s27 }
   0x6   :  { %v137_v9 = vsel %vm134_vm0, %v135_v5, %v136_v6  ;;  %146 = vset.pattern.permute.xlu2 %v178_v13  ;;  %vm65_vm2 = vcmask 31744   ;;  %v57_v27 = vld [vmem:[%s241_s3] sm:$0xff]  ;;  %vm82_vm7 = vcmask 7168   ;;  %v179_v43 = vmov 0.0   ;;  %s180_s3 = smov [#allocation2]  }
   0x7   :  { %v138_v10 = vcvt.f32.s32 %v137_v9  ;;  %v39_v11 = vsel %vm38_vm1, %v37_v8, 0.0  ;;  %v220_v14 = vand.u32 127, %v58_v12  ;;  %25 = vst [vmem:[#allocation2] sm:$0x1] %v179_v43  ;;  %s123_s4 = sshll.u32 %s180_s3, 4  ;;  %s124_s4 = int_to_ptr.vmem [resolvable:$true] %s123_s4 }
   0x8   :  { %40 = vadd.xlane.f32.xlu0 %v39_v11 }
   0x9   :  { %73 = vperm.xlu1 %145, %v138_v10   ;;  %vm103_vm8 = vcmp.eq.s32.totalorder %v220_v14, 0  ;;  %vm110_vm9 = vcmp.eq.s32.totalorder %v220_v14, 1  ;;  %vm113_vm10 = vcmp.eq.s32.totalorder %v220_v14, 2 }
   0xe   :  { %v102_v1 = vld [vmem:[#allocation2] sm:$0x1] }
  0x1c   :  { %61 = vperm.xlu0 %144, %v138_v10  }
  0x24   :  { %147 = vset.pattern.permute.xlu0 %v178_v13 }
  0x7b   :  { %v74_v16 = vpop.permute.xlu1 %73  ;;  %v41_v17 = vpop.xlane.xlu0 %40 }
  0x7c   :  { %vm75_vm3 = vcmp.eq.s32.totalorder %v220_v14, %v74_v16  ;;  %148 = vrsqrt.f32 %v41_v17  ;;  %vm49_vm4 = vcmp.eq.f32.partialorder %v41_v17, inf  ;;  %v52_v28 = vand.u32 2147483648, %v41_v17 }
  0x7d   :  { %v76_v18 = vsel %vm75_vm3, %v71_v15, 0.0  ;;  %vm51_vm6 = vcmp.eq.f32.partialorder %v41_v17, 0.0 }
  0x7e   :  { %v77_v19 = vsel %vm65_vm2, %v76_v18, 0.0 }
  0x7f   :  { %78 = vadd.xlane.f32.xlu2 %v77_v19 }
  0x82   :  { %v149_v20 = vpop.eup %148 }
  0x83   :  { %v43_v21 = vmul.f32 %v149_v20, %v41_v17 }
  0x85   :  { %v44_v22 = vmul.f32 %v149_v20, %v43_v21 }
  0x87   :  { %v45_v23 = vmul.f32 0.5, %v44_v22 }
  0x89   :  { %v46_v24 = vsub.f32 1.5, %v45_v23 }
  0x8b   :  { %v47_v25 = vmul.f32 %v149_v20, %v46_v24 }
  0x8d   :  { %v48_v26 = vmul.f32 %v47_v25, %v41_v17 }
  0x8e   :  { %v62_v29 = vpop.permute.xlu0 %61 }
  0x8f   :  { %vm63_vm5 = vcmp.eq.s32.totalorder %v220_v14, %v62_v29  ;;  %v50_v30 = vsel %vm49_vm4, %v41_v17, %v48_v26 }
  0x90   :  { %v64_v31 = vsel %vm63_vm5, %v57_v27, 0.0  ;;  %v53_v32 = vsel %vm51_vm6, %v52_v28, %v50_v30 }
  0x91   :  { %v66_v33 = vsel %vm65_vm2, %v64_v31, 0.0  ;;  %v54_v34 = vsub.f32 %v53_v32, %v32_v2 }
  0x92   :  { %67 = vadd.xlane.f32.xlu1 %v66_v33 }
  0x93   :  { %v55_v35 = vmul.f32 %v54_v34, %v54_v34 }
  0x95   :  { %v83_v36 = vsel %vm82_vm7, %v55_v35, 0.0 }
  0x96   :  { %v84_v37 = vrot.slane %v83_v36, 4 }
  0x98   :  { %v85_v38 = vadd.f32 %v84_v37, %v83_v36 }
  0x9a   :  { %v86_v39 = vrot.slane %v85_v38, 2 }
  0x9c   :  { %v87_v40 = vadd.f32 %v86_v39, %v85_v38 }
  0x9e   :  { %v88_v41 = vrot.slane %v87_v40, 1 }
  0xa0   :  { %v89_v42 = vadd.f32 %v88_v41, %v87_v40 }
  0xa2   :  { %106 = vperm.xlu2 %146, %v89_v42  }
  0xf2   :  { %v79_v44 = vpop.xlane.xlu2 %78 }
  0xf3   :  { %v80_v45 = vsub.f32 0.0, %v79_v44 }
  0xf5   :  { %v96_v46 = vrot.slane %v80_v45, 4 }
  0xf7   :  { %v97_v47 = vadd.f32 %v96_v46, %v80_v45 }
  0xf9   :  { %v98_v49 = vrot.slane %v97_v47, 2 }
  0xfb   :  { %v99_v52 = vadd.f32 %v98_v49, %v97_v47 }
  0xfc   :  { %v107_v58 = vpop.permute.xlu2 %106 }
  0xfd   :  { %v100_v55 = vrot.slane %v99_v52, 1  ;;  %v109_v61 = vsel %vm103_vm8, %v107_v58, 0.0 }
  0xff   :  { %v101_v59 = vadd.f32 %v100_v55, %v99_v52 }
 0x101   :  { %v114_v0 = vsel %vm113_vm10, %v101_v59, 0.0 }
 0x105   :  { %v68_v48 = vpop.xlane.xlu1 %67 }
 0x106   :  { %v69_v50 = vsub.f32 0.0, %v68_v48 }
 0x108   :  { %v90_v51 = vrot.slane %v69_v50, 4 }
 0x10a   :  { %v91_v53 = vadd.f32 %v90_v51, %v69_v50 }
 0x10c   :  { %v92_v54 = vrot.slane %v91_v53, 2 }
 0x10e   :  { %v93_v56 = vadd.f32 %v92_v54, %v91_v53 }
 0x110   :  { %v94_v57 = vrot.slane %v93_v56, 1 }
 0x112   :  { %v95_v60 = vadd.f32 %v94_v57, %v93_v56 }
 0x114   :  { %v111_v62 = vsel %vm110_vm9, %v95_v60, 0.0 }
 0x115   :  { %v112_v63 = vadd.f32 %v111_v62, %v109_v61 }
 0x117   :  { %v115_v2 = vadd.f32 %v114_v0, %v112_v63 }
 0x119   :  { %v116_v3 = vadd.f32 %v115_v2, %v102_v1 }
 0x11b   :  { %117 = vst [vmem:[#allocation2] sm:$0x1] %v116_v3 }
 0x11c   :  { %128 = dma.vmem_to_hbm [thread:$0]  %s124_s4, 16, %s126_s27, [#allocation3]  }
 0x11d   :  { %174 = dma.done.wait [#allocation3], 16  }
 0x11e   :  { %175 = vsyncadd [#allocation3], 4294967280 }
 0x11f   :  { %133 = vsyncpa [#allocation3], 1 }

</bundles_post_ra>
